<compile_context>
chip_gen: v5e
topology: v5e:2x2
jax: 0.10.0
libtpu: 0.0.40
codegen_flags: <defaults>
</compile_context>

<pallas_src>
import functools

import jax
import jax.numpy as jnp
from jax.experimental import pallas as pl
from jax.experimental.pallas import tpu as pltpu


def _cdiv(a, b):
    return (a + b - 1) // b


def _round_up(n, m):
    return ((n + m - 1) // m) * m


def _qkv_resident_kernel(x_ref, w_ref, b_ref, q_ref, kv_ref, *, qk_dim):
    # x_ref: (tm, dim); w_ref: (out_dim, dim) native nn.Linear layout;
    # b_ref: (1, out_dim) f32; q_ref: (tm, qk_dim); kv_ref: (tm, qk_dim+dim).
    acc = jax.lax.dot_general(
        x_ref[...], w_ref[...],
        dimension_numbers=(((1,), (1,)), ((), ())),   # x @ W^T on the MXU
        preferred_element_type=jnp.float32)
    acc = acc + b_ref[...]
    q_ref[...] = acc[:, :qk_dim].astype(q_ref.dtype)
    kv_ref[...] = acc[:, qk_dim:].astype(kv_ref.dtype)


def _qkv_streamed_kernel(x_ref, w_ref, b_ref, o_ref):
    # x_ref: (tm, dim); w_ref: (tn, dim); b_ref: (1, tn) f32; o_ref: (tm, tn).
    acc = jax.lax.dot_general(
        x_ref[...], w_ref[...],
        dimension_numbers=(((1,), (1,)), ((), ())),
        preferred_element_type=jnp.float32)
    o_ref[...] = (acc + b_ref[...]).astype(o_ref.dtype)


def qkv_linear_pallas(x, weight, bias, *, qk_dim, tm=256, tn=None,
                      compute_dtype=None, vmem_limit_bytes=None,
                      force_streamed=False):
    """Pallas equivalent of QKVLinear.forward.

    x:      (..., dim)
    weight: (out_dim, dim)   native nn.Linear layout, out_dim = 2*qk_dim + dim
    bias:   (out_dim,)
    compute_dtype: optional matmul operand dtype (jnp.bfloat16 halves x/W DMA
        and uses the bf16-native MXU on v5e/v6e/v7x).  Accumulation and the
        bias add stay in f32; outputs keep x.dtype.
    returns (q, kv, k, v) matching the PyTorch module.
    """
    dim = x.shape[-1]
    out_dim = weight.shape[0]
    assert out_dim == 2 * qk_dim + dim, (out_dim, qk_dim, dim)
    assert weight.shape == (out_dim, dim)
    assert bias.shape == (out_dim,)

    out_dtype = x.dtype
    lead = x.shape[:-1]
    x2 = x.reshape(-1, dim)
    M = x2.shape[0]

    if compute_dtype is not None:
        x2 = x2.astype(compute_dtype)
        weight = weight.astype(compute_dtype)
    # f32 bias row once in the wrapper -> no per-step cast inside the kernel.
    b2 = bias.astype(jnp.float32).reshape(1, out_dim)

    xsz = jnp.dtype(x2.dtype).itemsize
    wsz = jnp.dtype(weight.dtype).itemsize
    osz = jnp.dtype(out_dtype).itemsize
    sublane = max(8, 32 // xsz)          # 8 rows for f32, 16 for bf16

    # Large row tile for MXU occupancy, clamped for small M; ensure >= 2 row
    # tiles when M allows it so both v7x TensorCores get work.
    tm = max(sublane, min(_round_up(tm, sublane), _round_up(M, sublane)))
    if _cdiv(M, tm) < 2 and M > sublane:
        tm = _round_up(_cdiv(M, 2), sublane)
    m_tiles = _cdiv(M, tm)

    # Generation-aware VMEM budget (64 MiB/TC on v7x, 128 MiB on v5e/v6e).
    try:
        vmem_cap = int(pltpu.get_tpu_info().vmem_capacity_bytes)
    except Exception:
        vmem_cap = 64 * 1024 * 1024      # conservative: valid on every gen
    budget = vmem_cap * 3 // 4

    w_bytes = out_dim * dim * wsz
    x_bytes = M * dim * xsz
    bias_bytes = out_dim * 4

    cost = pl.CostEstimate(
        flops=2 * M * out_dim * dim,
        transcendentals=0,
        bytes_accessed=x_bytes + w_bytes + bias_bytes + M * out_dim * osz)

    # Double-buffered footprint of the fully-resident-weight path.
    resident_need = 2 * (tm * dim * xsz + w_bytes + bias_bytes
                         + tm * qk_dim * osz + tm * (qk_dim + dim) * osz)
    use_resident = (not force_streamed) and resident_need <= budget

    if use_resident:
        # ------- resident-weight fast path: q and kv written directly -------
        need = resident_need
        if vmem_limit_bytes is None:
            vmem_limit_bytes = int(min(max(need * 5 // 4, 32 * 1024 * 1024),
                                       vmem_cap * 9 // 10))
        kernel = functools.partial(_qkv_resident_kernel, qk_dim=qk_dim)
        q2, kv2 = pl.pallas_call(
            kernel,
            out_shape=(jax.ShapeDtypeStruct((M, qk_dim), out_dtype),
                       jax.ShapeDtypeStruct((M, qk_dim + dim), out_dtype)),
            grid_spec=pltpu.PrefetchScalarGridSpec(
                num_scalar_prefetch=0,
                grid=(m_tiles,),
                in_specs=[
                    pl.BlockSpec((tm, dim), lambda i: (i, 0)),         # x rows
                    pl.BlockSpec((out_dim, dim), lambda i: (0, 0)),    # W (constant -> fetched once)
                    pl.BlockSpec((1, out_dim), lambda i: (0, 0)),      # bias f32
                ],
                out_specs=[
                    pl.BlockSpec((tm, qk_dim), lambda i: (i, 0)),
                    pl.BlockSpec((tm, qk_dim + dim), lambda i: (i, 0)),
                ],
            ),
            compiler_params=pltpu.CompilerParams(
                dimension_semantics=("parallel",),
                vmem_limit_bytes=vmem_limit_bytes),
            cost_estimate=cost,
        )(x2, weight, b2)
        q = q2.reshape(lead + (qk_dim,))
        kv = kv2.reshape(lead + (qk_dim + dim,))
    else:
        # ------- streamed-weight path (large models) -------------------------
        if tn is None:
            for cand in (512, 384, 256, 128):
                if out_dim % cand == 0:
                    tn = cand
                    break
            else:
                tn = 256
        tn = min(_round_up(tn, 128), _round_up(out_dim, 128))
        # Shrink tiles until the double-buffered footprint fits the budget.
        while True:
            need = 2 * (tm * dim * xsz + tn * dim * wsz + tn * 4 + tm * tn * osz)
            if need <= budget:
                break
            if tn > 128:
                tn = max(128, (tn // 2) // 128 * 128)
            elif tm > sublane:
                tm = max(sublane, _round_up(tm // 2, sublane))
            else:
                break
        m_tiles = _cdiv(M, tm)
        n_tiles = _cdiv(out_dim, tn)
        if vmem_limit_bytes is None:
            vmem_limit_bytes = int(min(max(need * 5 // 4, 32 * 1024 * 1024),
                                       vmem_cap * 9 // 10))
        # Grid order by re-stream cost: the operand whose block index is
        # constant along the inner axis is not re-DMA'd by Pallas; the other
        # is re-read (n_tiles-1) or (m_tiles-1) extra times.
        if (n_tiles - 1) * x_bytes <= (m_tiles - 1) * w_bytes:
            grid = (n_tiles, m_tiles)        # W streamed once, x re-read n_tiles x
            in_specs = [
                pl.BlockSpec((tm, dim), lambda j, i: (i, 0)),
                pl.BlockSpec((tn, dim), lambda j, i: (j, 0)),
                pl.BlockSpec((1, tn), lambda j, i: (0, j)),
            ]
            out_spec = pl.BlockSpec((tm, tn), lambda j, i: (i, j))
        else:
            grid = (m_tiles, n_tiles)        # x streamed once, W re-read m_tiles x
            in_specs = [
                pl.BlockSpec((tm, dim), lambda i, j: (i, 0)),
                pl.BlockSpec((tn, dim), lambda i, j: (j, 0)),
                pl.BlockSpec((1, tn), lambda i, j: (0, j)),
            ]
            out_spec = pl.BlockSpec((tm, tn), lambda i, j: (i, j))
        out = pl.pallas_call(
            _qkv_streamed_kernel,
            out_shape=jax.ShapeDtypeStruct((M, out_dim), out_dtype),
            grid_spec=pltpu.PrefetchScalarGridSpec(
                num_scalar_prefetch=0,
                grid=grid,
                in_specs=in_specs,
                out_specs=out_spec,
            ),
            compiler_params=pltpu.CompilerParams(
                dimension_semantics=("parallel", "parallel"),
                vmem_limit_bytes=vmem_limit_bytes),
            cost_estimate=cost,
        )(x2, weight, b2)
        out = out.reshape(lead + (out_dim,))
        q = out[..., :qk_dim]
        kv = out[..., qk_dim:]

    k = kv[..., :qk_dim]
    v = kv[..., qk_dim:]
    return q, kv, k, v


if __name__ == "__main__":
    # ---- small shapes consistent with the module -----------------------------
    B, N, DIM, QK_DIM = 2, 8, 32, 16
    OUT_DIM = 2 * QK_DIM + DIM

    key = jax.random.PRNGKey(0)
    kx, kw, kb = jax.random.split(key, 3)

    x = jax.random.normal(kx, (B, N, DIM), dtype=jnp.float32)
    bound = 1.0 / (DIM ** 0.5)
    weight = jax.random.uniform(kw, (OUT_DIM, DIM), minval=-bound, maxval=bound,
                                dtype=jnp.float32)
    bias = jax.random.uniform(kb, (OUT_DIM,), minval=-bound, maxval=bound,
                              dtype=jnp.float32)

    ref = x @ weight.T + bias
    q_r = ref[..., :QK_DIM]
    k_r = ref[..., QK_DIM:2 * QK_DIM]
    v_r = ref[..., 2 * QK_DIM:]
    kv_r = jnp.concatenate([k_r, v_r], axis=-1)

    # f32 resident-weight path.
    q, kv, k, v = qkv_linear_pallas(x, weight, bias, qk_dim=QK_DIM)
    jax.block_until_ready((q, kv, k, v))
    assert q.shape == (B, N, QK_DIM)
    assert kv.shape == (B, N, QK_DIM + DIM)
    assert k.shape == (B, N, QK_DIM)
    assert v.shape == (B, N, DIM)
    for got, want in ((q, q_r), (kv, kv_r), (k, k_r), (v, v_r)):
        assert jnp.allclose(got, want, atol=1e-5, rtol=1e-5)

    # bf16-operand fast path (f32 accumulation; looser tolerance).
    q16, kv16, k16, v16 = qkv_linear_pallas(
        x, weight, bias, qk_dim=QK_DIM, compute_dtype=jnp.bfloat16)
    jax.block_until_ready((q16, kv16, k16, v16))
    for got, want in ((q16, q_r), (kv16, kv_r), (k16, k_r), (v16, v_r)):
        assert jnp.allclose(got, want, atol=5e-2, rtol=5e-2)

    # Second shape: exercises large row tiles, the ragged last row block
    # (M = 400 rows, tm = 256) and — forced — the streamed-weight path with a
    # multi-tile out_dim grid and re-stream-cost grid ordering.
    B2, N2, DIM2, QK2 = 2, 200, 128, 64
    OUT2 = 2 * QK2 + DIM2
    k1, k2, k3 = jax.random.split(jax.random.PRNGKey(1), 3)
    x_b = jax.random.normal(k1, (B2, N2, DIM2), dtype=jnp.float32)
    bound2 = 1.0 / (DIM2 ** 0.5)
    w_b = jax.random.uniform(k2, (OUT2, DIM2), minval=-bound2, maxval=bound2,
                             dtype=jnp.float32)
    b_b = jax.random.uniform(k3, (OUT2,), minval=-bound2, maxval=bound2,
                             dtype=jnp.float32)
    ref2 = x_b @ w_b.T + b_b

    # resident path
    q2, kv2, k2_, v2 = qkv_linear_pallas(x_b, w_b, b_b, qk_dim=QK2)
    jax.block_until_ready((q2, kv2, k2_, v2))
    assert jnp.allclose(q2, ref2[..., :QK2], atol=1e-3, rtol=1e-3)
    assert jnp.allclose(kv2, ref2[..., QK2:], atol=1e-3, rtol=1e-3)
    assert jnp.allclose(k2_, ref2[..., QK2:2 * QK2], atol=1e-3, rtol=1e-3)
    assert jnp.allclose(v2, ref2[..., 2 * QK2:], atol=1e-3, rtol=1e-3)

    # forced streamed path (tn=128 -> 2 out_dim tiles, ragged row edge)
    q3, kv3, k3_, v3 = qkv_linear_pallas(x_b, w_b, b_b, qk_dim=QK2,
                                         tn=128, force_streamed=True)
    jax.block_until_ready((q3, kv3, k3_, v3))
    assert jnp.allclose(q3, ref2[..., :QK2], atol=1e-3, rtol=1e-3)
    assert jnp.allclose(kv3, ref2[..., QK2:], atol=1e-3, rtol=1e-3)
    assert jnp.allclose(k3_, ref2[..., QK2:2 * QK2], atol=1e-3, rtol=1e-3)
    assert jnp.allclose(v3, ref2[..., 2 * QK2:], atol=1e-3, rtol=1e-3)

    print("KERNEL_OK")
</pallas_src>

<mosaic_0001>
module attributes {stable_mosaic.version = 11 : i64} {
  func.func @_qkv_resident_kernel(%arg0: i32, %arg1: memref<8x32xf32, #tpu.memory_space<vmem>>, %arg2: memref<64x32xf32, #tpu.memory_space<vmem>>, %arg3: memref<1x64xf32, #tpu.memory_space<vmem>>, %arg4: memref<8x16xf32, #tpu.memory_space<vmem>>, %arg5: memref<8x48xf32, #tpu.memory_space<vmem>>) attributes {dimension_semantics = [#tpu.dimension_semantics<parallel>], iteration_bounds = array<i64: 2>, scalar_prefetch = 0 : i64, scratch_operands = 0 : i64, tpu.core_type = #tpu.core_type<tc>, window_params = [{transform_indices = @transform_0, window_bounds = array<i64: 8, 32>}, {pipeline_mode = #tpu.pipeline_mode<synchronous>, transform_indices = @transform_1, window_bounds = array<i64: 64, 32>}, {pipeline_mode = #tpu.pipeline_mode<synchronous>, transform_indices = @transform_2, window_bounds = array<i64: 1, 64>}, {transform_indices = @transform_3, window_bounds = array<i64: 8, 16>}, {transform_indices = @transform_4, window_bounds = array<i64: 8, 48>}]} {
    %c0 = arith.constant 0 : index
    %c0_0 = arith.constant 0 : index
    %0 = vector.load %arg1[%c0, %c0_0] : memref<8x32xf32, #tpu.memory_space<vmem>>, vector<8x32xf32>
    %c0_1 = arith.constant 0 : index
    %c0_2 = arith.constant 0 : index
    %1 = vector.load %arg2[%c0_1, %c0_2] : memref<64x32xf32, #tpu.memory_space<vmem>>, vector<64x32xf32>
    %cst = arith.constant dense<0.000000e+00> : vector<8x64xf32>
    %2 = tpu.matmul %0, %1, %cst {dimension_numbers = #tpu.dot_dimension_numbers<[1], [1], [0], [0], [0, 0, 1, 0], [], []>} : vector<8x32xf32>, vector<64x32xf32>, vector<8x64xf32> -> vector<8x64xf32>
    %c0_3 = arith.constant 0 : index
    %c0_4 = arith.constant 0 : index
    %3 = vector.load %arg3[%c0_3, %c0_4] : memref<1x64xf32, #tpu.memory_space<vmem>>, vector<1x64xf32>
    %4 = vector.broadcast %3 : vector<1x64xf32> to vector<8x64xf32>
    %5 = arith.addf %2, %4 : vector<8x64xf32>
    %6 = vector.extract_strided_slice %5 {offsets = [0, 0], sizes = [8, 16], strides = [1, 1]} : vector<8x64xf32> to vector<8x16xf32>
    %c0_5 = arith.constant 0 : index
    %c0_6 = arith.constant 0 : index
    %7 = vector.load %arg4[%c0_5, %c0_6] : memref<8x16xf32, #tpu.memory_space<vmem>>, vector<8x16xf32>
    tpu.vector_store %arg4[%c0_5, %c0_6], %6 {strides = array<i32>} : memref<8x16xf32, #tpu.memory_space<vmem>>, vector<8x16xf32>,
    %8 = vector.extract_strided_slice %5 {offsets = [0, 16], sizes = [8, 48], strides = [1, 1]} : vector<8x64xf32> to vector<8x48xf32>
    %c0_7 = arith.constant 0 : index
    %c0_8 = arith.constant 0 : index
    %9 = vector.load %arg5[%c0_7, %c0_8] : memref<8x48xf32, #tpu.memory_space<vmem>>, vector<8x48xf32>
    tpu.vector_store %arg5[%c0_7, %c0_8], %8 {strides = array<i32>} : memref<8x48xf32, #tpu.memory_space<vmem>>, vector<8x48xf32>,
    return
  }
  func.func @transform_0(%arg0: i32) -> (i32, i32) {
    %c0_i32 = arith.constant 0 : i32
    %c0_i32_0 = arith.constant 0 : i32
    return %arg0, %c0_i32 : i32, i32
  }
  func.func @transform_1(%arg0: i32) -> (i32, i32) {
    %c0_i32 = arith.constant 0 : i32
    %c0_i32_0 = arith.constant 0 : i32
    %c0_i32_1 = arith.constant 0 : i32
    return %c0_i32, %c0_i32_0 : i32, i32
  }
  func.func @transform_2(%arg0: i32) -> (i32, i32) {
    %c0_i32 = arith.constant 0 : i32
    %c0_i32_0 = arith.constant 0 : i32
    %c0_i32_1 = arith.constant 0 : i32
    return %c0_i32, %c0_i32_0 : i32, i32
  }
  func.func @transform_3(%arg0: i32) -> (i32, i32) {
    %c0_i32 = arith.constant 0 : i32
    %c0_i32_0 = arith.constant 0 : i32
    return %arg0, %c0_i32 : i32, i32
  }
  func.func @transform_4(%arg0: i32) -> (i32, i32) {
    %c0_i32 = arith.constant 0 : i32
    %c0_i32_0 = arith.constant 0 : i32
    return %arg0, %c0_i32 : i32, i32
  }
}

</mosaic_0001>

<bundles_post_ra>
// kernel: tpu_custom_call.1
= control target key start
LH: loop header
LB: loop body
LE: loop exit
PB: predicated region body
PF: predicated region fallthrough
CT: control target
= control target key end

     0   :  { %10 = vsyncpa [#allocation3], 0  ;;  %s737_s0 = inlined_call_operand.vmem [shape: f32[16,32], index: 0, kind: input, shape index: {}]   ;;  %s738_s1 = inlined_call_operand.vmem [shape: f32[64,32], index: 1, kind: input, shape index: {}]   ;;  %s739_s2 = inlined_call_operand.vmem [shape: f32[1,64], index: 2, kind: input, shape index: {}]   ;;  %s740_s3 = inlined_call_operand.hbm [shape: f32[16,16], index: 3, kind: output, shape index: {0}]   ;;  %s741_s4 = inlined_call_operand.hbm [shape: f32[16,48], index: 4, kind: output, shape index: {1}]  }
   0x1   :  { %12 = vsyncpa [#allocation3 + $0x1], 0 }
   0x2   :  { %13 = vsyncpa [#allocation5], 0 }
   0x3   :  { %15 = vsyncpa [#allocation5 + $0x1], 0  ;;  %s590_s15 = smov 0   ;;  %s592_s16 = smov 0  }
   0x4   :  { %s594_s17 = smov 0   ;;  %s596_s18 = smov 0  }
   0x5 LB: > { %s611_s19 = sadd.s32 4294967295, %s562_s18   ;;  %s400_s20 = sadd.s32 4294967294, %s562_s18   ;;  %s562_s18 = sphi %s596_s18, %s747_s18   ;;  %s558_s17 = sphi %s594_s17, %s746_s17   ;;  %s554_s16 = sphi %s592_s16, %s745_s16   ;;  %s550_s15 = sphi %s590_s15, %s744_s15  }
   0x6   : > { %s615_s21 = sadd.s32 1, %s562_s18   ;;  %s96_s22 = sadd.s32 1, %s558_s17 }
   0x7   : > { %s93_s23 = ssub.s32 %s562_s18, %s615_s21  ;;  %p106_p0 = scmp.ne.s32.totalorder %s558_s17, %s554_s16 }
   0x8   : > { %p94_p1 = scmp.eq.s32.totalorder %s93_s23, 0  ;;  %p107_p2 = scmp.eq.s32.totalorder %s611_s19, 1 }
   0x9   : > { %p112_p3 = scmp.ne.s32.totalorder %s554_s16, %s550_s15  ;;  %p113_p4 = scmp.eq.s32.totalorder %s400_s20, 1 }
   0xa   : > { %s626_s24 = scalar_select %p94_p1, %s558_s17, %s96_s22  }
   0xb   : > { %p628_p5 = por %p107_p2, %p106_p0  ;;  %p632_p6 = por %p113_p4, %p112_p3 }
   0xc   : > { %p403_p7 = scmp.ge.s32.totalorder %s562_s18, 1  ;;  %p170_p8 = scmp.lt.s32.totalorder %s562_s18, 3 }
   0xe   : > { %p171_p9 = pnand %p403_p7, %p170_p8 }
   0xf   : > { %p200_p10 = scmp.lt.s32.totalorder (!%p171_p9), %s611_s19, 1  ;;  %s677_s5 = sand.u32 (!%p171_p9), 1, %s554_s16  }
  0x10   : > { %174 = sbr.rel (%p171_p9) target bundleno = 299 (0x12b), region = 32  ;;  %s418_s6 = sshll.u32 (!%p171_p9), %s611_s19, 3 }
  0x11   : > { %s404_s7 = sshll.u32 (!%p171_p9), %s677_s5, 3  ;;  %s289_s10 = scalar_lea.hbm (!%p171_p9), %s740_s3, %s418_s6 }
  0x12   : > { %s293_s20 = sshll.u32 (!%p171_p9), %s289_s10, 4  ;;  %s274_s23 = scalar_lea.sflag (!%p171_p9), [#allocation3], %s677_s5  ;;  %s294_s20 = int_to_ptr.hbm [resolvable:$true] %s293_s20 }
  0x13   : > { %s482_s27 = sshra.s32 (!%p171_p9), %s294_s20, 4  ;;  %s488_s8 = scalar_lea.hbm (!%p171_p9), %s740_s3, 16  ;;  %s483_s27 = int_to_ptr.hbm [resolvable:$true] %s482_s27 }
  0x14   : > { %s484_s28 = scalar_lea.hbm (!%p171_p9), %s483_s27, 8  ;;  %p489_p0 = scmp.lt.s32.totalorder (!%p171_p9), %s483_s27, %s740_s3 }
  0x15   : > { %v212_v0 = vld [vmem:[%s738_s1 + $0x38] sm:$0xff]  ;;  %vm217_vm0 = vcmask 261120   ;;  %v211_v1 = vld [vmem:[%s738_s1 + $0x30] sm:$0xff]  ;;  %v210_v2 = vld [vmem:[%s738_s1 + $0x28] sm:$0xff]  ;;  %s201_s13 = scalar_select %p200_p10, %s611_s19, 1  ;;  %vm265_vm1 = vcmask 130048  }
  0x16   : > { %407 = vmatpush.xpose.msk.msra.mxu0 %vm217_vm0, %v212_v0  ;;  %v209_v3 = vld [vmem:[%s738_s1 + $0x20] sm:$0xff]  ;;  %v208_v4 = vld [vmem:[%s738_s1 + $0x18] sm:$0xff]  ;;  %v207_v5 = vld [vmem:[%s738_s1 + $0x10] sm:$0xff]  ;;  %p485_p11 = scmp.ne.s32.totalorder %s483_s27, %s484_s28  ;;  %p490_p1 = scmp.lt.s32.totalorder %s488_s8, %s484_s28 }
  0x17   : > { %v206_v6 = vld [vmem:[%s738_s1 + $0x8] sm:$0xff]  ;;  %s406_s22 = sshll.u32 %s201_s13, 3  ;;  %v205_v7 = vld [vmem:[%s738_s1] sm:$0xff]  ;;  %s192_s13 = scalar_lea.vmem [#allocation2], %s404_s7 }
  0x18   : > { %s203_s30 = scalar_lea.vmem %s737_s0, %s406_s22  ;;  %v467_v9 = vld [vmem:[%s739_s2] ss:$0 sm:$0xff]  ;;  %s291_s14 = sshll.u32 %s192_s13, 4  ;;  %s292_s14 = int_to_ptr.vmem [resolvable:$true] %s291_s14 }
  0x19   : > { %v204_v8 = vld [vmem:[%s203_s30] sm:$0xff]  ;;  %s564_s22 = smov 112   ;;  %p486_p12 = pnand %p485_p11, %p628_p5 }
  0x1a   : > { %408 = vmatpush.xpose.msk.msra.mxu0 %vm217_vm0, %v211_v1  ;;  %p491_p2 = por %p490_p1, %p489_p0 }
  0x1b   : > { %p487_p13 = pneg %p486_p12 }
  0x1d   : > { %p492_p3 = pnand %p491_p2, %p487_p13 }
  0x1e   : > { %409 = vmatpush.xpose.msk.msra.mxu0 %vm217_vm0, %v210_v2 }
  0x22   : > { %410 = vmatpush.xpose.msk.msra.mxu0 %vm217_vm0, %v209_v3 }
  0x26   : > { %411 = vmatpush.xpose.msk.msra.mxu0 %vm217_vm0, %v208_v4 }
  0x2a   : > { %412 = vmatpush.xpose.msk.msra.mxu0 %vm217_vm0, %v207_v5 }
  0x2e   : > { %413 = vmatpush.xpose.msk.msra.mxu0 %vm217_vm0, %v206_v6 }
  0x32   : > { %414 = vmatpush.xpose.msk.msra.mxu0 %vm217_vm0, %v205_v7 }
  0x35   : > { %415 = vmatmul.msk.f32.vlgmr.msra.gmra.mxu0 %vm217_vm0, %v204_v8 }
  0xb2   : > { %v262_v10 = vpop.f32.mrf.mxu0 }
  0xb3   : > { %v263_v11 = vadd.f32 %v467_v9, %v262_v10 }
  0xb5   : > { %268 = vrot.lane.b32.xlu0 %v263_v11, %s564_s22  ;;  %266 = vst.msk [vmem:[%s192_s13] sm:$0xff] %vm265_vm1, %v263_v11 }
  0xb6   : > { %495 = shalt.err (!%p492_p3)
}
  0xb7   : > { %422 = dma.vmem_to_hbm [thread:$0]  (%p628_p5), %s292_s14, 128, %s294_s20, %s274_s23   ;;  %vm271_vm2 = vcmask 392192  }
  0xb8   : > { %s303_s13 = scalar_lea.hbm %s741_s4, %s418_s6  ;;  %s199_s22 = scalar_lea.vmem [#allocation4], %s404_s7 }
  0xb9   : > { %s305_s29 = sshll.u32 %s199_s22, 4  ;;  %s307_s27 = sshll.u32 %s303_s13, 4  ;;  %s306_s29 = int_to_ptr.vmem [resolvable:$true] %s305_s29  ;;  %s308_s27 = int_to_ptr.hbm [resolvable:$true] %s307_s27 }
  0xba   : > { %s279_s28 = scalar_lea.sflag [#allocation5], %s677_s5  ;;  %s510_s30 = sshra.s32 %s308_s27, 4  ;;  %s511_s30 = int_to_ptr.hbm [resolvable:$true] %s510_s30 }
  0xbb   : > { %s512_s8 = scalar_lea.hbm %s511_s30, 8  ;;  %s516_s6 = scalar_lea.hbm %s741_s4, 16 }
  0xbc   : > { %p513_p4 = scmp.ne.s32.totalorder %s511_s30, %s512_s8  ;;  %p517_p9 = scmp.lt.s32.totalorder %s511_s30, %s741_s4 }
  0xbd   : > { %p518_p10 = scmp.lt.s32.totalorder %s516_s6, %s512_s8 }
  0xbe   : > { %p514_p7 = pnand %p513_p4, %p628_p5 }
  0xbf   : > { %p519_p11 = por %p518_p10, %p517_p9 }
  0xc0   : > { %p515_p8 = pneg %p514_p7 }
  0xc2   : > { %p520_p12 = pnand %p519_p11, %p515_p8 }
 0x127   : > { %v269_v12 = vpop.permute.xlu0 %268 }
 0x128   : > { %272 = vst.msk [vmem:[%s199_s22] sm:$0xff] %vm271_vm2, %v269_v12 }
 0x129   : > { %523 = shalt.err (!%p520_p12)
}
 0x12a   : > { %423 = dma.vmem_to_hbm [thread:$0]  (%p628_p5), %s306_s29, 128, %s308_s27, %s279_s28  }
 0x12b PF: > { %p433_p13 = scmp.ge.s32.totalorder %s562_s18, 2  ;;  %s319_s5 = sand.u32 1, %s550_s15  }
 0x12c   : > { %s320_s23 = scalar_lea.sflag [#allocation3], %s319_s5 }
 0x12d   : > { %p427_p0 = pnand %p433_p13, %p632_p6 }
 0x12f   : > { %p428_p1 = pneg %p427_p0 }
 0x131   : > { %541 = dma.done.wait (%p428_p1), %s320_s23, 128  }
 0x132   : > { %543 = vsyncadd (%p428_p1), %s320_s23, 4294967168  ;;  %s330_s9 = scalar_lea.sflag [#allocation5], %s319_s5 }
 0x133   : > { %545 = dma.done.wait (%p428_p1), %s330_s9, 128  }
 0x134   : > { %547 = vsyncadd (%p428_p1), %s330_s9, 4294967168  ;;  %p18_p5 = scmp.ge.s32.totalorder %s615_s21, 4   ;;  %s744_s15 = smov %s554_s16 }
 0x135   : > { %s745_s16 = smov %s558_s17  ;;  %s746_s17 = smov %s626_s24 }
 0x136   : > { %s747_s18 = smov %s615_s21  ;;  %20 = sbr.rel (!%p18_p5) target bundleno = 5 (0x5), region = 84 }
 0x13b   :  { %336 = vsyncpa [#allocation3], 1 }
 0x13c   :  { %338 = vsyncpa [#allocation3 + $0x1], 1 }
 0x13d   :  { %339 = vsyncpa [#allocation5], 1 }
 0x13e   :  { %341 = vsyncpa [#allocation5 + $0x1], 1 }

</bundles_post_ra>
